<compile_context>
chip_gen: v6e
topology: v6e:2x2x1
jax: 0.10.0
libtpu: 0.0.40
codegen_flags: <defaults>
</compile_context>

<pallas_src>
import jax
import jax.numpy as jnp
from jax.experimental import pallas as pl
from jax.experimental.pallas import tpu as pltpu

IN_DIM = 500      # logical input features (matches nn.Linear(500, 10))
OUT_DIM = 10      # logical output features
OUT_PAD = 128     # 10 padded to a full lane-dense vreg width (unmasked stores)


def _round_up(x, m):
    return ((x + m - 1) // m) * m


def _pick_batch_tile(B, batch_tile):
    """Batch tile: large (<= batch_tile) to amortize the ~0.35us per-grid-step cost,
    clamped to the (8-rounded) batch for tiny inputs, and capped at ceil(B/2) for
    splittable batches so the parallel grid has >= 2 steps (v7x has two TCs)."""
    bt = min(batch_tile, _round_up(B, 8))
    if B > 8:
        bt = min(bt, _round_up(pl.cdiv(B, 2), 8))
    return max(bt, 8)


def _classifier_kernel(x_ref, w_ref, b_ref, o_ref):
    # ReLU in f32 (v5e VPU has no bf16 ALU), then a single cast to bf16 for the MXU.
    h = jnp.maximum(x_ref[...], 0.0).astype(jnp.bfloat16)
    # TODO(synk): training-mode F.dropout (p=0.5) not implemented; inference forward
    # treats dropout as identity (training would use pltpu.prng_seed/prng_random_bits).
    # Linear(500, 10): bf16 x bf16 -> f32 accumulation on the MXU (K=500 handled by
    # Mosaic's internal layout padding/masking).
    z = jnp.dot(h, w_ref[...], preferred_element_type=jnp.float32)
    o_ref[...] = (z + b_ref[...]).astype(o_ref.dtype)


def prepare_params(params):
    """One-time parameter prep (hoisted out of the per-call path): W stored as
    (500, 128) bf16 with the output dim zero-padded lane-dense, b as (1, 128) f32."""
    w, b = params                      # w: (500, 10) == W.T vs PyTorch; b: (10,)
    w_p = jnp.pad(w.astype(jnp.bfloat16), ((0, 0), (0, OUT_PAD - OUT_DIM)))
    b_p = jnp.pad(b.reshape(1, OUT_DIM).astype(jnp.float32),
                  ((0, 0), (0, OUT_PAD - OUT_DIM)))
    return w_p, b_p


def classifier_forward(x, prepared_params, *, batch_tile=512):
    """x: (B, 500) float32 -> (B, 10) float32 logits (inference forward)."""
    w_p, b_p = prepared_params
    B = x.shape[0]
    bt = _pick_batch_tile(B, batch_tile)
    grid = (pl.cdiv(B, bt),)           # partial last block handled by Pallas

    out_padded = pl.pallas_call(
        _classifier_kernel,
        out_shape=jax.ShapeDtypeStruct((B, OUT_PAD), jnp.float32),
        grid_spec=pltpu.PrefetchScalarGridSpec(
            num_scalar_prefetch=0,
            grid=grid,
            in_specs=[
                pl.BlockSpec((bt, IN_DIM), lambda i: (i, 0)),        # x tile (f32, unpadded)
                pl.BlockSpec((IN_DIM, OUT_PAD), lambda i: (0, 0)),   # W (resident, bf16)
                pl.BlockSpec((1, OUT_PAD), lambda i: (0, 0)),        # b (f32)
            ],
            out_specs=pl.BlockSpec((bt, OUT_PAD), lambda i: (i, 0)),  # lane-dense output
        ),
        compiler_params=pltpu.CompilerParams(
            dimension_semantics=("parallel",),
        ),
    )(x.astype(jnp.float32), w_p, b_p)

    # Strip the output-lane padding back to the module's logical shape.
    return out_padded[:, :OUT_DIM]


def init_params(key):
    """Deterministic synthetic parameters matching nn.Linear(500, 10) shapes."""
    k1, k2 = jax.random.split(key)
    # Stored as (in_features, out_features) == W.T relative to PyTorch.
    w = jax.random.normal(k1, (IN_DIM, OUT_DIM), jnp.float32) * 0.05
    b = jax.random.normal(k2, (OUT_DIM,), jnp.float32) * 0.05
    return (w, b)


def reference_forward(x, params):
    """Plain-JAX f32 reference matching the PyTorch module (eval mode)."""
    w, b = params
    h = jnp.maximum(x, 0.0)            # F.relu; dropout is identity in eval
    return h @ w + b                   # nn.Linear(500, 10)


if __name__ == "__main__":
    key = jax.random.PRNGKey(0)
    kx, kp = jax.random.split(key)

    params = init_params(kp)
    prepared = prepare_params(params)

    # Main check: small batch (multiple of 8), feature dim fixed at 500 by the module.
    B = 8
    x = jax.random.normal(kx, (B, IN_DIM), jnp.float32)
    out = jax.block_until_ready(classifier_forward(x, prepared))
    ref = reference_forward(x, params)
    assert out.shape == (B, OUT_DIM)
    # bf16 matmul operands with f32 accumulation: loose tolerance vs the f32 reference.
    assert jnp.allclose(out, ref, atol=5e-2, rtol=5e-2), "mismatch vs reference (B=8)"

    # Exercise the cdiv / partial-last-block path (13 rows -> blocks of 8 + 5).
    B2 = 13
    x2 = jax.random.normal(jax.random.fold_in(kx, 1), (B2, IN_DIM), jnp.float32)
    out2 = jax.block_until_ready(classifier_forward(x2, prepared))
    ref2 = reference_forward(x2, params)
    assert out2.shape == (B2, OUT_DIM)
    assert jnp.allclose(out2, ref2, atol=5e-2, rtol=5e-2), "mismatch vs reference (B=13)"

    print("KERNEL_OK")
</pallas_src>

<mosaic_0001>
module attributes {stable_mosaic.version = 11 : i64} {
  func.func @_classifier_kernel(%arg0: i32, %arg1: memref<8x500xf32, #tpu.memory_space<vmem>>, %arg2: memref<500x128xbf16, #tpu.memory_space<vmem>>, %arg3: memref<1x128xf32, #tpu.memory_space<vmem>>, %arg4: memref<8x128xf32, #tpu.memory_space<vmem>>) attributes {dimension_semantics = [#tpu.dimension_semantics<parallel>], iteration_bounds = array<i64: 1>, scalar_prefetch = 0 : i64, scratch_operands = 0 : i64, tpu.core_type = #tpu.core_type<tc>, window_params = [{transform_indices = @transform_0, window_bounds = array<i64: 8, 500>}, {pipeline_mode = #tpu.pipeline_mode<synchronous>, transform_indices = @transform_1, window_bounds = array<i64: 500, 128>}, {pipeline_mode = #tpu.pipeline_mode<synchronous>, transform_indices = @transform_2, window_bounds = array<i64: 1, 128>}, {transform_indices = @transform_3, window_bounds = array<i64: 8, 128>}]} {
    %c0 = arith.constant 0 : index
    %c0_0 = arith.constant 0 : index
    %0 = vector.load %arg1[%c0, %c0_0] : memref<8x500xf32, #tpu.memory_space<vmem>>, vector<8x500xf32>
    %cst = arith.constant 0.000000e+00 : f32
    %1 = vector.broadcast %cst : f32 to vector<8x500xf32>
    %2 = arith.maximumf %0, %1 : vector<8x500xf32>
    %3 = arith.truncf %2 : vector<8x500xf32> to vector<8x500xbf16>
    %c0_1 = arith.constant 0 : index
    %c0_2 = arith.constant 0 : index
    %4 = vector.load %arg2[%c0_1, %c0_2] : memref<500x128xbf16, #tpu.memory_space<vmem>>, vector<500x128xbf16>
    %cst_3 = arith.constant dense<0.000000e+00> : vector<8x128xf32>
    %5 = tpu.matmul %3, %4, %cst_3 {dimension_numbers = #tpu.dot_dimension_numbers<[1], [0], [0], [1], [0, 0, 1, 1], [], []>} : vector<8x500xbf16>, vector<500x128xbf16>, vector<8x128xf32> -> vector<8x128xf32>
    %c0_4 = arith.constant 0 : index
    %c0_5 = arith.constant 0 : index
    %6 = vector.load %arg3[%c0_4, %c0_5] : memref<1x128xf32, #tpu.memory_space<vmem>>, vector<1x128xf32>
    %7 = vector.broadcast %6 : vector<1x128xf32> to vector<8x128xf32>
    %8 = arith.addf %5, %7 : vector<8x128xf32>
    %c0_6 = arith.constant 0 : index
    %c0_7 = arith.constant 0 : index
    %9 = vector.load %arg4[%c0_6, %c0_7] : memref<8x128xf32, #tpu.memory_space<vmem>>, vector<8x128xf32>
    tpu.vector_store %arg4[%c0_6, %c0_7], %8 {strides = array<i32>} : memref<8x128xf32, #tpu.memory_space<vmem>>, vector<8x128xf32>,
    return
  }
  func.func @transform_0(%arg0: i32) -> (i32, i32) {
    %c0_i32 = arith.constant 0 : i32
    %c0_i32_0 = arith.constant 0 : i32
    return %arg0, %c0_i32 : i32, i32
  }
  func.func @transform_1(%arg0: i32) -> (i32, i32) {
    %c0_i32 = arith.constant 0 : i32
    %c0_i32_0 = arith.constant 0 : i32
    %c0_i32_1 = arith.constant 0 : i32
    return %c0_i32, %c0_i32_0 : i32, i32
  }
  func.func @transform_2(%arg0: i32) -> (i32, i32) {
    %c0_i32 = arith.constant 0 : i32
    %c0_i32_0 = arith.constant 0 : i32
    %c0_i32_1 = arith.constant 0 : i32
    return %c0_i32, %c0_i32_0 : i32, i32
  }
  func.func @transform_3(%arg0: i32) -> (i32, i32) {
    %c0_i32 = arith.constant 0 : i32
    %c0_i32_0 = arith.constant 0 : i32
    return %arg0, %c0_i32 : i32, i32
  }
}

</mosaic_0001>

<bundles_post_ra>
// kernel: tpu_custom_call.1
= control target key start
LH: loop header
LB: loop body
LE: loop exit
PB: predicated region body
PF: predicated region fallthrough
CT: control target
= control target key end

     0   :  { %8 = vsyncpa [#allocation3], 0  ;;  %s637_s0 = inlined_call_operand.hbm [shape: f32[8,500], index: 0, kind: input, shape index: {}]   ;;  %s638_s1 = inlined_call_operand.hbm [shape: bf16[500,128], index: 1, kind: input, shape index: {}]   ;;  %s639_s2 = inlined_call_operand.vmem [shape: f32[1,128], index: 2, kind: input, shape index: {}]   ;;  %s640_s3 = inlined_call_operand.hbm [shape: f32[8,128], index: 3, kind: output, shape index: {}]  }
   0x1   :  { %9 = vsyncpa [#allocation6], 0 }
   0x2   :  { %10 = vsyncpa [#allocation4], 0  ;;  %s600_s12 = smov [#allocation2]   ;;  %s601_s14 = smov [#allocation5]  }
   0x3   :  { %s17_s13 = sshll.u32 %s600_s12, 4  ;;  %s26_s15 = sshll.u32 %s601_s14, 4  ;;  %s18_s13 = int_to_ptr.vmem [resolvable:$true] %s17_s13  ;;  %s27_s15 = int_to_ptr.vmem [resolvable:$true] %s26_s15 }
   0x4   :  { %s542_s16 = scalar_lea.vmem %s18_s13, 512  ;;  %p547_p1 = scmp.lt.s32.totalorder %s18_s13, %s18_s13 }
   0x5   :  { %p543_p0 = scmp.ne.s32.totalorder %s18_s13, %s542_s16  ;;  %p548_p2 = scmp.lt.s32.totalorder %s542_s16, %s542_s16 }
   0x7   :  { %p549_p3 = por %p548_p2, %p547_p1 }
   0x9   :  { %p550_p4 = pnand %p549_p3, %p543_p0 }
   0xb   :  { %553 = shalt.err (!%p550_p4)
}
   0xc   :  { %20 = dma.hbm_to_vmem [thread:$0]  %s637_s0, 512, %s18_s13, [#allocation3]  }
   0xd   :  { %s562_s19 = scalar_lea.vmem %s27_s15, 4032  ;;  %p567_p6 = scmp.lt.s32.totalorder %s27_s15, %s27_s15 }
   0xe   :  { %p563_p5 = scmp.ne.s32.totalorder %s27_s15, %s562_s19  ;;  %p568_p7 = scmp.lt.s32.totalorder %s562_s19, %s562_s19 }
  0x10   :  { %p569_p8 = por %p568_p7, %p567_p6 }
  0x12   :  { %p570_p9 = pnand %p569_p8, %p563_p5 }
  0x14   :  { %573 = shalt.err (!%p570_p9)
}
  0x15   :  { %s602_s20 = smov 64   ;;  %s603_s21 = smov 4  }
  0x16   :  { %32 = dma.hbm_to_vmem [thread:$0]  %s638_s1, 4032, %s27_s15, [#allocation6], %s602_s20, %s602_s20, %s603_s21  }
  0x17   :  { %594 = dma.done.wait [#allocation3], 512  }
  0x18   :  { %595 = vsyncadd [#allocation3], 4294966784 }
  0x19   :  { %596 = dma.done.wait [#allocation6], 4032  }
  0x1a   :  { %597 = vsyncadd [#allocation6], 4294963264  ;;  %v502_v0 = vld [vmem:[#allocation5 + $0x78] sm:$0xff]   ;;  %vm317_vm0 = vcmask 1041408   ;;  %v506_v4 = vld [vmem:[#allocation5 + $0x70] sm:$0xff]   ;;  %vm313_vm1 = vcmask 949248  }
  0x1b   :  { %v503_v1 = vld [vmem:[#allocation5 + $0xf8] ss:$0 sps:$4 sm:$0x33]   ;;  %452 = vmatprep.subr.bf16.mxu0 %v502_v0  ;;  %v507_v5 = vld [vmem:[#allocation5 + $0xf0] sm:$0xff]   ;;  %v510_v8 = vld [vmem:[#allocation5 + $0x68] sm:$0xff]   ;;  %s604_s24 = smov [#allocation7]  }
  0x1c   :  { %v504_v2 = vld [vmem:[#allocation5 + $0x38] sm:$0xff]   ;;  %496 = vmatprep.subr.msk.bf16.mxu1 %vm317_vm0, %v503_v1  ;;  %v508_v6 = vld [vmem:[#allocation5 + $0x30] sm:$0xff]   ;;  %v511_v9 = vld [vmem:[#allocation5 + $0xe8] sm:$0xff]   ;;  %s408_s25 = sshll.u32 %s604_s24, 4  ;;  %s409_s25 = int_to_ptr.vmem [resolvable:$true] %s408_s25 }
  0x1d   :  { %453 = vmatpush3.bf16.msra.mxu0 %v504_v2  ;;  %v505_v3 = vld [vmem:[#allocation5 + $0xb8] sm:$0xff]   ;;  %v509_v7 = vld [vmem:[#allocation5 + $0xb0] sm:$0xff]   ;;  %v512_v10 = vld [vmem:[#allocation5 + $0x28] sm:$0xff]   ;;  %s574_s26 = scalar_lea.vmem %s409_s25, 128  ;;  %p579_p11 = scmp.lt.s32.totalorder %s409_s25, %s409_s25 }
  0x1e   :  { %475 = vmatpush3.bf16.msra.mxu1 %v505_v3  ;;  %454 = vmatprep.subr.bf16.mxu0 %v506_v4  ;;  %v513_v11 = vld [vmem:[#allocation5 + $0xa8] sm:$0xff]   ;;  %v514_v12 = vld [vmem:[#allocation5 + $0x60] sm:$0xff]   ;;  %v518_v16 = vld [vmem:[#allocation5 + $0x58] sm:$0xff]   ;;  %p575_p10 = scmp.ne.s32.totalorder %s409_s25, %s574_s26  ;;  %p580_p12 = scmp.lt.s32.totalorder %s574_s26, %s574_s26 }
  0x1f   :  { %476 = vmatprep.subr.bf16.mxu1 %v507_v5  ;;  %v515_v13 = vld [vmem:[#allocation5 + $0xe0] sm:$0xff]   ;;  %v519_v17 = vld [vmem:[#allocation5 + $0xd8] sm:$0xff]   ;;  %v522_v20 = vld [vmem:[#allocation5 + $0x50] sm:$0xff]  }
  0x20   :  { %v516_v14 = vld [vmem:[#allocation5 + $0x20] sm:$0xff]   ;;  %v520_v18 = vld [vmem:[#allocation5 + $0x18] sm:$0xff]   ;;  %v523_v21 = vld [vmem:[#allocation5 + $0xd0] sm:$0xff]   ;;  %p581_p13 = por %p580_p12, %p579_p11 }
  0x21   :  { %455 = vmatpush3.bf16.msra.mxu0 %v508_v6  ;;  %v517_v15 = vld [vmem:[#allocation5 + $0xa0] sm:$0xff]   ;;  %v521_v19 = vld [vmem:[#allocation5 + $0x98] sm:$0xff]   ;;  %v524_v22 = vld [vmem:[#allocation5 + $0x10] sm:$0xff]  }
  0x22   :  { %477 = vmatpush3.bf16.msra.mxu1 %v509_v7  ;;  %456 = vmatprep.subr.bf16.mxu0 %v510_v8  ;;  %v525_v23 = vld [vmem:[#allocation5 + $0x90] sm:$0xff]   ;;  %v526_v24 = vld [vmem:[#allocation5 + $0x48] sm:$0xff]   ;;  %v530_v28 = vld [vmem:[#allocation5 + $0x40] sm:$0xff]   ;;  %p582_p0 = pnand %p581_p13, %p575_p10 }
  0x23   :  { %478 = vmatprep.subr.bf16.mxu1 %v511_v9  ;;  %v527_v25 = vld [vmem:[#allocation5 + $0xc8] sm:$0xff]   ;;  %v531_v29 = vld [vmem:[#allocation5 + $0xc0] sm:$0xff]   ;;  %v45_v34 = vld [vmem:[#allocation2 + $0x18] sm:$0xff] }
  0x24   :  { %v528_v26 = vld [vmem:[#allocation5 + $0x8] sm:$0xff]   ;;  %v532_v30 = vld [vmem:[#allocation5] sm:$0xff]   ;;  %v44_v36 = vld [vmem:[#allocation2 + $0x10] sm:$0xff]  ;;  %v49_v37 = vmax.f32 %v45_v34, 0.0 }
  0x25   :  { %457 = vmatpush3.bf16.msra.mxu0 %v512_v10  ;;  %v529_v27 = vld [vmem:[#allocation5 + $0x88] sm:$0xff]   ;;  %v533_v31 = vld [vmem:[#allocation5 + $0x80] sm:$0xff]   ;;  %v48_v39 = vmax.f32 %v44_v36, 0.0 }
  0x26   :  { %479 = vmatpush3.bf16.msra.mxu1 %v513_v11  ;;  %458 = vmatprep.subr.bf16.mxu0 %v514_v12  ;;  %v43_v32 = vld [vmem:[#allocation2 + $0x8] sm:$0xff]  ;;  %v42_v35 = vld [vmem:[#allocation2] sm:$0xff]  ;;  %v53_v41 = vpack.c.bf16 %v49_v37, %v49_v37 }
  0x27   :  { %480 = vmatprep.subr.bf16.mxu1 %v515_v13  ;;  %v47_v33 = vmax.f32 %v43_v32, 0.0  ;;  %v46_v38 = vmax.f32 %v42_v35, 0.0  ;;  %v52_v43 = vpack.c.bf16 %v48_v39, %v48_v39  ;;  %v418_v46 = vld [vmem:[%s639_s2] ss:$0 sm:$0xff] }
  0x28   :  { %451 = vmatprep.mubr.msk.bf16.mxu1 %vm313_vm1, %v53_v41 }
  0x29   :  { %459 = vmatpush3.bf16.msra.mxu0 %v516_v14  ;;  %v51_v40 = vpack.c.bf16 %v47_v33, %v47_v33  ;;  %v50_v42 = vpack.c.bf16 %v46_v38, %v46_v38 }
  0x2a   :  { %481 = vmatpush3.bf16.msra.mxu1 %v517_v15  ;;  %460 = vmatprep.subr.bf16.mxu0 %v518_v16 }
  0x2b   :  { %482 = vmatprep.subr.bf16.mxu1 %v519_v17  ;;  %353 = vmatprep.mubr.bf16.mxu0 %v51_v40 }
  0x2d   :  { %461 = vmatpush3.bf16.msra.mxu0 %v520_v18 }
  0x2e   :  { %483 = vmatpush3.bf16.msra.mxu1 %v521_v19  ;;  %462 = vmatprep.subr.bf16.mxu0 %v522_v20 }
  0x2f   :  { %484 = vmatprep.subr.bf16.mxu1 %v523_v21 }
  0x31   :  { %463 = vmatpush3.bf16.msra.mxu0 %v524_v22 }
  0x32   :  { %485 = vmatpush3.bf16.msra.mxu1 %v525_v23  ;;  %464 = vmatprep.subr.bf16.mxu0 %v526_v24 }
  0x33   :  { %486 = vmatprep.subr.bf16.mxu1 %v527_v25 }
  0x35   :  { %465 = vmatpush3.bf16.msra.mxu0 %v528_v26 }
  0x36   :  { %487 = vmatpush3.bf16.msra.mxu1 %v529_v27  ;;  %466 = vmatprep.subr.bf16.mxu0 %v530_v28 }
  0x37   :  { %488 = vmatprep.subr.bf16.mxu1 %v531_v29 }
  0x39   :  { %467 = vmatpush3.bf16.msra.mxu0 %v532_v30 }
  0x3a   :  { %489 = vmatpush3.bf16.msra.mxu1 %v533_v31 }
  0x3c   :  { %354 = vmatmul.mubr.bf16.vlgmr.msra.gmra.mxu0 %v50_v42 }
  0x3d   :  { %394 = vmatmul.mubr.bf16.vlgmr.msra.gmra.mxu1 %v52_v43 }
  0xfc   :  { %v468_v44 = vpop.f32.mrf.mxu0 }
  0xfd   :  { %v490_v45 = vpop.f32.mrf.mxu1 }
  0xfe   :  { %v469_v47 = vpop.f32.mrf.mxu0 }
  0xff   :  { %v470_v48 = vadd.f32 %v469_v47, %v468_v44  ;;  %v491_v49 = vpop.f32.mrf.mxu1 }
 0x100   :  { %v471_v50 = vpop.f32.mrf.mxu0  ;;  %v492_v52 = vadd.f32 %v491_v49, %v490_v45 }
 0x101   :  { %v356_v51 = vadd.f32 %v470_v48, %v418_v46  ;;  %v493_v53 = vpop.f32.mrf.mxu1 }
 0x102   :  { %v472_v54 = vpop.f32.mrf.mxu0 }
 0x103   :  { %v396_v55 = vadd.f32 %v492_v52, %v356_v51  ;;  %v494_v56 = vpop.f32.mrf.mxu1 }
 0x105   :  { %401 = vst [vmem:[#allocation7] sm:$0xff] %v396_v55 }
 0x106   :  { %585 = shalt.err (!%p582_p0)
}
 0x107   :  { %411 = dma.vmem_to_hbm [thread:$0]  %s409_s25, 128, %s640_s3, [#allocation4]  }
 0x108   :  { %598 = dma.done.wait [#allocation4], 128  }
 0x109   :  { %599 = vsyncadd [#allocation4], 4294967168 }
 0x10a   :  { %415 = vsyncpa [#allocation3], 1 }
 0x10b   :  { %416 = vsyncpa [#allocation6], 1 }
 0x10c   :  { %417 = vsyncpa [#allocation4], 1 }

</bundles_post_ra>
